<compile_context>
chip_gen: v5e
topology: v5e:2x2
jax: 0.10.0
libtpu: 0.0.40
codegen_flags: <defaults>
</compile_context>

<pallas_src>
import math

import jax
import jax.numpy as jnp
from jax.experimental import pallas as pl
from jax.experimental.pallas import tpu as pltpu


_MXU_LINEAR_MIN_C = 128  # below this a [1,C]x[C,C] MXU matmul is pure overhead


def _pe2d_kernel(x_ref, pe_w_ref, pe_h_ref, w1t_ref, b1_ref, w2t_ref, b2_ref,
                 o_ref):
    """Processes one tile of Bt batch elements.

    x_ref   : [Bt, C, HW]   NCHW input with H,W collapsed (lane dim = H*W)
    pe_w_ref: [HW, C]       pe[w, :] per flattened spatial position r = h*W + w
    pe_h_ref: [HW, C]       pe[h, :] per flattened spatial position
    w?t_ref : [C, C]        Linear weights, pre-transposed (y = x @ W^T + b)
    b?_ref  : [1, C]
    o_ref   : [HW, Bt*C]    columns [b*C, (b+1)*C) hold batch element b
    """
    bt, C, HW = x_ref.shape

    # Loop-invariant operands: load once, reuse for every batch element.
    pe_w = pe_w_ref[...]
    pe_h = pe_h_ref[...]
    w1t = w1t_ref[...]
    w2t = w2t_ref[...]
    b1 = b1_ref[...]
    b2 = b2_ref[...]

    for b in range(bt):                       # static and small (<= 8 typical)
        xb = x_ref[b]                         # [C, HW]: single read of x
        x_t = jnp.transpose(xb)               # [HW, C]: one XLU transpose

        if C >= _MXU_LINEAR_MIN_C:
            # AdaptiveAvgPool2d((1,1)) == spatial mean (sublane reduce -> row),
            # then the two linears on the otherwise-idle MXU.
            pooled = jnp.mean(x_t, axis=0, keepdims=True)                  # [1, C]
            w1 = jnp.dot(pooled, w1t, preferred_element_type=jnp.float32) + b1
            w2 = jnp.dot(pooled, w2t, preferred_element_type=jnp.float32) + b2
        else:
            # Tiny C: lane-dense mean on the native [C, HW] layout and an
            # exact-f32 VPU multiply + sublane reduce for the linears.
            pooled_col = jnp.mean(xb, axis=1, keepdims=True)               # [C, 1]
            w1 = jnp.sum(pooled_col * w1t, axis=0, keepdims=True) + b1     # [1, C]
            w2 = jnp.sum(pooled_col * w2t, axis=0, keepdims=True) + b2     # [1, C]

        # y[r, c] = x[b, c, h, w] + pe[w, c] * w1[c] + pe[h, c] * w2[c]
        y = x_t + pe_w * w1 + pe_h * w2                                    # [HW, C]
        o_ref[:, b * C:(b + 1) * C] = y.astype(o_ref.dtype)


def _ceil_to(x, m):
    return -(-x // m) * m


def _pick_batch_tile(batch, dim, hw):
    """Batch elements per grid step.

    Bt must divide B; when Bt < B the output lane block (Bt*dim) must be a
    multiple of 128 so writeback stays lane-aligned.  Prefer splitting (>= 2
    grid steps feeds both v7x TensorCores) while keeping the double-buffered
    x/out blocks comfortably inside the tightest (v5e, 16 MiB) scoped default.
    """
    def blocks_bytes(bt):
        return 4 * 2 * (bt * dim * hw + hw * bt * dim)   # x + out, double-buffered

    for bt in (8, 4, 2, 1):
        if (batch > bt and batch % bt == 0 and (bt * dim) % 128 == 0
                and blocks_bytes(bt) <= 8 * 2**20):
            return bt
    return batch                                          # full batch in one block


def make_pe_table(max_len, dim, dtype=jnp.float32):
    position = jnp.arange(max_len, dtype=jnp.float32)[:, None]
    div_term = jnp.exp(
        jnp.arange(0, dim, 2, dtype=jnp.float32) * (-math.log(10000.0) / dim)
    )
    pe = jnp.zeros((max_len, dim), dtype=jnp.float32)
    pe = pe.at[:, 0::2].set(jnp.sin(position * div_term))
    pe = pe.at[:, 1::2].set(jnp.cos(position * div_term))
    return pe.astype(dtype)


def positional_encoding_2d(x_nchw, pe, w1_mat, b1, w2_mat, b2):
    """x_nchw: [B, C, H, W] float32 -> [H*W, B, C] float32 (eval-mode forward)."""
    B, C, H, W = x_nchw.shape
    HW = H * W

    x_flat = x_nchw.reshape(B, C, HW)                 # metadata-only view
    # Per-flattened-position PE tables (r = h*W + w):
    pe_w_grid = jnp.tile(pe[:W, :], (H, 1))           # [HW, C]  row r -> pe[w]
    pe_h_grid = jnp.repeat(pe[:H, :], W, axis=0)      # [HW, C]  row r -> pe[h]
    # Pre-transpose the linear weights once (y = x @ W^T + b); keep them as two
    # separate operands so no lane-offset slicing is needed when C % 128 != 0.
    w1t = w1_mat.T
    w2t = w2_mat.T
    b1r = b1.reshape(1, C)
    b2r = b2.reshape(1, C)

    bt = _pick_batch_tile(B, C, HW)
    assert B % bt == 0
    grid = (B // bt,)

    # Scoped-VMEM budget: double-buffered x/out blocks plus the resident tables.
    est = 4 * (
        2 * bt * _ceil_to(C, 8) * _ceil_to(HW, 128)        # x blocks
        + 2 * _ceil_to(HW, 8) * _ceil_to(bt * C, 128)      # out blocks
        + 2 * 2 * _ceil_to(HW, 8) * _ceil_to(C, 128)       # pe_w / pe_h tables
        + 2 * 2 * (_ceil_to(C, 8) + 8) * _ceil_to(C, 128)  # weights + biases
    )
    vmem_limit = None
    if est > 8 * 2**20:   # only override the per-generation defaults when needed
        vmem_limit = int(min(max(2 * est, 32 * 2**20), 48 * 2**20))

    out_flat = pl.pallas_call(
        _pe2d_kernel,
        out_shape=jax.ShapeDtypeStruct((HW, B * C), x_nchw.dtype),
        grid_spec=pltpu.PrefetchScalarGridSpec(
            num_scalar_prefetch=0,
            grid=grid,
            in_specs=[
                pl.BlockSpec((bt, C, HW), lambda i: (i, 0, 0)),   # x (batch tile)
                pl.BlockSpec((HW, C), lambda i: (0, 0)),          # pe per width pos
                pl.BlockSpec((HW, C), lambda i: (0, 0)),          # pe per height pos
                pl.BlockSpec((C, C), lambda i: (0, 0)),           # W1^T
                pl.BlockSpec((1, C), lambda i: (0, 0)),           # b1
                pl.BlockSpec((C, C), lambda i: (0, 0)),           # W2^T
                pl.BlockSpec((1, C), lambda i: (0, 0)),           # b2
            ],
            out_specs=pl.BlockSpec((HW, bt * C), lambda i: (0, i)),
        ),
        compiler_params=pltpu.CompilerParams(
            dimension_semantics=("parallel",),
            vmem_limit_bytes=vmem_limit,
        ),
    )(x_flat, pe_w_grid, pe_h_grid, w1t, b1r, w2t, b2r)

    # [HW, B*C] -> [H*W, B, C]: splitting the minor dim is metadata-only.
    # TODO(synk): nn.Dropout is identity in eval mode; training-mode dropout not implemented.
    return out_flat.reshape(HW, B, C)


def reference_forward(x_nchw, pe, w1_mat, b1, w2_mat, b2):
    """Pure-JAX mirror of the PyTorch forward (eval mode), f32-exact matmuls."""
    B, C, H, W = x_nchw.shape
    hp = jax.lax.Precision.HIGHEST
    pooled = jnp.mean(x_nchw, axis=(2, 3))                              # [B, C]
    w1 = jnp.dot(pooled, w1_mat.T, precision=hp) + b1                   # [B, C]
    w2 = jnp.dot(pooled, w2_mat.T, precision=hp) + b2                   # [B, C]
    w_pe = pe[:W, :][None, :, :] * w1[:, None, :]                       # [B, W, C]
    w_pe = jnp.transpose(w_pe, (0, 2, 1))[:, :, None, :]                # [B, C, 1, W]
    h_pe = pe[:H, :][None, :, :] * w2[:, None, :]                       # [B, H, C]
    h_pe = jnp.transpose(h_pe, (0, 2, 1))[:, :, :, None]                # [B, C, H, 1]
    y = x_nchw + w_pe + h_pe                                            # [B, C, H, W]
    y = y.reshape(B, C, H * W)
    return jnp.transpose(y, (2, 0, 1))                                  # [H*W, B, C]


if __name__ == "__main__":
    max_len = 64  # only rows < max(H, W) are ever used

    # (B, C, H, W): covers the full-batch-in-one-block path, the Bt=8 multi-step
    # (megacore) path, and an odd batch size.
    configs = [
        (2, 32, 8, 16),
        (16, 32, 8, 16),
        (3, 32, 4, 8),
    ]

    key = jax.random.PRNGKey(0)
    for (B, C, H, W) in configs:
        key, kx, kw1, kw2, kb1, kb2 = jax.random.split(key, 6)

        x = jax.random.normal(kx, (B, C, H, W), dtype=jnp.float32)
        # The module's __init__ fills the linear weights with 1.0; random weights
        # are used here so the test actually exercises the linear path.
        w1_mat = jax.random.normal(kw1, (C, C), dtype=jnp.float32) * 0.1
        w2_mat = jax.random.normal(kw2, (C, C), dtype=jnp.float32) * 0.1
        b1 = jax.random.uniform(kb1, (C,), dtype=jnp.float32, minval=-0.1, maxval=0.1)
        b2 = jax.random.uniform(kb2, (C,), dtype=jnp.float32, minval=-0.1, maxval=0.1)
        pe = make_pe_table(max_len, C)

        out = jax.block_until_ready(
            positional_encoding_2d(x, pe, w1_mat, b1, w2_mat, b2))
        ref = reference_forward(x, pe, w1_mat, b1, w2_mat, b2)

        assert out.shape == (H * W, B, C), out.shape
        if not jnp.allclose(out, ref, atol=1e-4, rtol=1e-4):
            max_err = jnp.max(jnp.abs(out - ref))
            raise AssertionError(
                f"Mismatch for (B,C,H,W)={(B, C, H, W)}: max abs err = {max_err}")

    print("KERNEL_OK")
</pallas_src>

<mosaic_0001>
module attributes {stable_mosaic.version = 11 : i64} {
  func.func @_pe2d_kernel(%arg0: i32, %arg1: memref<2x32x128xf32, #tpu.memory_space<vmem>>, %arg2: memref<128x32xf32, #tpu.memory_space<vmem>>, %arg3: memref<128x32xf32, #tpu.memory_space<vmem>>, %arg4: memref<32x32xf32, #tpu.memory_space<vmem>>, %arg5: memref<1x32xf32, #tpu.memory_space<vmem>>, %arg6: memref<32x32xf32, #tpu.memory_space<vmem>>, %arg7: memref<1x32xf32, #tpu.memory_space<vmem>>, %arg8: memref<128x64xf32, #tpu.memory_space<vmem>>) attributes {dimension_semantics = [#tpu.dimension_semantics<parallel>], iteration_bounds = array<i64: 1>, scalar_prefetch = 0 : i64, scratch_operands = 0 : i64, tpu.core_type = #tpu.core_type<tc>, window_params = [{transform_indices = @transform_0, window_bounds = array<i64: 2, 32, 128>}, {pipeline_mode = #tpu.pipeline_mode<synchronous>, transform_indices = @transform_1, window_bounds = array<i64: 128, 32>}, {pipeline_mode = #tpu.pipeline_mode<synchronous>, transform_indices = @transform_2, window_bounds = array<i64: 128, 32>}, {pipeline_mode = #tpu.pipeline_mode<synchronous>, transform_indices = @transform_3, window_bounds = array<i64: 32, 32>}, {pipeline_mode = #tpu.pipeline_mode<synchronous>, transform_indices = @transform_4, window_bounds = array<i64: 1, 32>}, {pipeline_mode = #tpu.pipeline_mode<synchronous>, transform_indices = @transform_5, window_bounds = array<i64: 32, 32>}, {pipeline_mode = #tpu.pipeline_mode<synchronous>, transform_indices = @transform_6, window_bounds = array<i64: 1, 32>}, {transform_indices = @transform_7, window_bounds = array<i64: 128, 64>}]} {
    %c0 = arith.constant 0 : index
    %c0_0 = arith.constant 0 : index
    %0 = vector.load %arg2[%c0, %c0_0] : memref<128x32xf32, #tpu.memory_space<vmem>>, vector<128x32xf32>
    %c0_1 = arith.constant 0 : index
    %c0_2 = arith.constant 0 : index
    %1 = vector.load %arg3[%c0_1, %c0_2] : memref<128x32xf32, #tpu.memory_space<vmem>>, vector<128x32xf32>
    %c0_3 = arith.constant 0 : index
    %c0_4 = arith.constant 0 : index
    %2 = vector.load %arg4[%c0_3, %c0_4] : memref<32x32xf32, #tpu.memory_space<vmem>>, vector<32x32xf32>
    %c0_5 = arith.constant 0 : index
    %c0_6 = arith.constant 0 : index
    %3 = vector.load %arg6[%c0_5, %c0_6] : memref<32x32xf32, #tpu.memory_space<vmem>>, vector<32x32xf32>
    %c0_7 = arith.constant 0 : index
    %c0_8 = arith.constant 0 : index
    %4 = vector.load %arg5[%c0_7, %c0_8] : memref<1x32xf32, #tpu.memory_space<vmem>>, vector<1x32xf32>
    %c0_9 = arith.constant 0 : index
    %c0_10 = arith.constant 0 : index
    %5 = vector.load %arg7[%c0_9, %c0_10] : memref<1x32xf32, #tpu.memory_space<vmem>>, vector<1x32xf32>
    %c0_11 = arith.constant 0 : index
    %c0_12 = arith.constant 0 : index
    %c0_13 = arith.constant 0 : index
    %6 = vector.load %arg1[%c0_11, %c0_12, %c0_13] : memref<2x32x128xf32, #tpu.memory_space<vmem>>, vector<1x32x128xf32>
    %7 = vector.shape_cast %6 : vector<1x32x128xf32> to vector<32x128xf32>
    %8 = tpu.transpose %7, [1, 0] : vector<32x128xf32> -> vector<128x32xf32>
    %cst = arith.constant dense<0.000000e+00> : vector<32xf32>
    %9 = vector.multi_reduction <add>, %7, %cst [1] : vector<32x128xf32> to vector<32xf32>
    %10 = vector.shape_cast %9 : vector<32xf32> to vector<32x1xf32>
    %cst_14 = arith.constant 1.280000e+02 : f32
    %11 = vector.broadcast %cst_14 : f32 to vector<32x1xf32>
    %12 = arith.divf %10, %11 : vector<32x1xf32>
    %13 = vector.broadcast %12 : vector<32x1xf32> to vector<32x32xf32>
    %14 = arith.mulf %13, %2 : vector<32x32xf32>
    %cst_15 = arith.constant dense<0.000000e+00> : vector<32xf32>
    %15 = vector.multi_reduction <add>, %14, %cst_15 [0] : vector<32x32xf32> to vector<32xf32>
    %16 = vector.shape_cast %15 : vector<32xf32> to vector<1x32xf32>
    %17 = arith.addf %16, %4 : vector<1x32xf32>
    %18 = vector.broadcast %12 : vector<32x1xf32> to vector<32x32xf32>
    %19 = arith.mulf %18, %3 : vector<32x32xf32>
    %cst_16 = arith.constant dense<0.000000e+00> : vector<32xf32>
    %20 = vector.multi_reduction <add>, %19, %cst_16 [0] : vector<32x32xf32> to vector<32xf32>
    %21 = vector.shape_cast %20 : vector<32xf32> to vector<1x32xf32>
    %22 = arith.addf %21, %5 : vector<1x32xf32>
    %23 = vector.broadcast %17 : vector<1x32xf32> to vector<128x32xf32>
    %24 = arith.mulf %0, %23 : vector<128x32xf32>
    %25 = arith.addf %8, %24 : vector<128x32xf32>
    %26 = vector.broadcast %22 : vector<1x32xf32> to vector<128x32xf32>
    %27 = arith.mulf %1, %26 : vector<128x32xf32>
    %28 = arith.addf %25, %27 : vector<128x32xf32>
    %c0_17 = arith.constant 0 : index
    %c0_18 = arith.constant 0 : index
    %29 = vector.load %arg8[%c0_17, %c0_18] : memref<128x64xf32, #tpu.memory_space<vmem>>, vector<128x32xf32>
    tpu.vector_store %arg8[%c0_17, %c0_18], %28 {strides = array<i32>} : memref<128x64xf32, #tpu.memory_space<vmem>>, vector<128x32xf32>,
    %c1 = arith.constant 1 : index
    %c0_19 = arith.constant 0 : index
    %c0_20 = arith.constant 0 : index
    %30 = vector.load %arg1[%c1, %c0_19, %c0_20] : memref<2x32x128xf32, #tpu.memory_space<vmem>>, vector<1x32x128xf32>
    %31 = vector.shape_cast %30 : vector<1x32x128xf32> to vector<32x128xf32>
    %32 = tpu.transpose %31, [1, 0] : vector<32x128xf32> -> vector<128x32xf32>
    %cst_21 = arith.constant dense<0.000000e+00> : vector<32xf32>
    %33 = vector.multi_reduction <add>, %31, %cst_21 [1] : vector<32x128xf32> to vector<32xf32>
    %34 = vector.shape_cast %33 : vector<32xf32> to vector<32x1xf32>
    %cst_22 = arith.constant 1.280000e+02 : f32
    %35 = vector.broadcast %cst_22 : f32 to vector<32x1xf32>
    %36 = arith.divf %34, %35 : vector<32x1xf32>
    %37 = vector.broadcast %36 : vector<32x1xf32> to vector<32x32xf32>
    %38 = arith.mulf %37, %2 : vector<32x32xf32>
    %cst_23 = arith.constant dense<0.000000e+00> : vector<32xf32>
    %39 = vector.multi_reduction <add>, %38, %cst_23 [0] : vector<32x32xf32> to vector<32xf32>
    %40 = vector.shape_cast %39 : vector<32xf32> to vector<1x32xf32>
    %41 = arith.addf %40, %4 : vector<1x32xf32>
    %42 = vector.broadcast %36 : vector<32x1xf32> to vector<32x32xf32>
    %43 = arith.mulf %42, %3 : vector<32x32xf32>
    %cst_24 = arith.constant dense<0.000000e+00> : vector<32xf32>
    %44 = vector.multi_reduction <add>, %43, %cst_24 [0] : vector<32x32xf32> to vector<32xf32>
    %45 = vector.shape_cast %44 : vector<32xf32> to vector<1x32xf32>
    %46 = arith.addf %45, %5 : vector<1x32xf32>
    %47 = vector.broadcast %41 : vector<1x32xf32> to vector<128x32xf32>
    %48 = arith.mulf %0, %47 : vector<128x32xf32>
    %49 = arith.addf %32, %48 : vector<128x32xf32>
    %50 = vector.broadcast %46 : vector<1x32xf32> to vector<128x32xf32>
    %51 = arith.mulf %1, %50 : vector<128x32xf32>
    %52 = arith.addf %49, %51 : vector<128x32xf32>
    %c0_25 = arith.constant 0 : index
    %c32 = arith.constant 32 : index
    %53 = vector.load %arg8[%c0_25, %c32] : memref<128x64xf32, #tpu.memory_space<vmem>>, vector<128x32xf32>
    tpu.vector_store %arg8[%c0_25, %c32], %52 {strides = array<i32>} : memref<128x64xf32, #tpu.memory_space<vmem>>, vector<128x32xf32>,
    return
  }
  func.func @transform_0(%arg0: i32) -> (i32, i32, i32) {
    %c0_i32 = arith.constant 0 : i32
    %c0_i32_0 = arith.constant 0 : i32
    %c0_i32_1 = arith.constant 0 : i32
    return %arg0, %c0_i32, %c0_i32_0 : i32, i32, i32
  }
  func.func @transform_1(%arg0: i32) -> (i32, i32) {
    %c0_i32 = arith.constant 0 : i32
    %c0_i32_0 = arith.constant 0 : i32
    %c0_i32_1 = arith.constant 0 : i32
    return %c0_i32, %c0_i32_0 : i32, i32
  }
  func.func @transform_2(%arg0: i32) -> (i32, i32) {
    %c0_i32 = arith.constant 0 : i32
    %c0_i32_0 = arith.constant 0 : i32
    %c0_i32_1 = arith.constant 0 : i32
    return %c0_i32, %c0_i32_0 : i32, i32
  }
  func.func @transform_3(%arg0: i32) -> (i32, i32) {
    %c0_i32 = arith.constant 0 : i32
    %c0_i32_0 = arith.constant 0 : i32
    %c0_i32_1 = arith.constant 0 : i32
    return %c0_i32, %c0_i32_0 : i32, i32
  }
  func.func @transform_4(%arg0: i32) -> (i32, i32) {
    %c0_i32 = arith.constant 0 : i32
    %c0_i32_0 = arith.constant 0 : i32
    %c0_i32_1 = arith.constant 0 : i32
    return %c0_i32, %c0_i32_0 : i32, i32
  }
  func.func @transform_5(%arg0: i32) -> (i32, i32) {
    %c0_i32 = arith.constant 0 : i32
    %c0_i32_0 = arith.constant 0 : i32
    %c0_i32_1 = arith.constant 0 : i32
    return %c0_i32, %c0_i32_0 : i32, i32
  }
  func.func @transform_6(%arg0: i32) -> (i32, i32) {
    %c0_i32 = arith.constant 0 : i32
    %c0_i32_0 = arith.constant 0 : i32
    %c0_i32_1 = arith.constant 0 : i32
    return %c0_i32, %c0_i32_0 : i32, i32
  }
  func.func @transform_7(%arg0: i32) -> (i32, i32) {
    %c0_i32 = arith.constant 0 : i32
    %c0_i32_0 = arith.constant 0 : i32
    return %c0_i32, %arg0 : i32, i32
  }
}

</mosaic_0001>

<bundles_post_ra>
// kernel: tpu_custom_call.1
= control target key start
LH: loop header
LB: loop body
LE: loop exit
PB: predicated region body
PF: predicated region fallthrough
CT: control target
= control target key end

     0   :  { %v487_v35 = vmov 128.0   ;;  %vm127_vm1 = vcmask 261120   ;;  %s488_s24 = smov 32   ;;  %vm457_vm2 = vcmask 523520   ;;  %s1066_s0 = inlined_call_operand.vmem [shape: f32[2,32,128], index: 0, kind: input, shape index: {}]   ;;  %s1067_s3 = inlined_call_operand.vmem [shape: f32[32,32], index: 3, kind: input, shape index: {}]   ;;  %s1068_s5 = inlined_call_operand.vmem [shape: f32[32,32], index: 5, kind: input, shape index: {}]   ;;  %s1069_s4 = inlined_call_operand.vmem [shape: f32[1,32], index: 4, kind: input, shape index: {}]   ;;  %s1070_s6 = inlined_call_operand.vmem [shape: f32[1,32], index: 6, kind: input, shape index: {}]   ;;  %s1071_s1 = inlined_call_operand.vmem [shape: f32[128,32], index: 1, kind: input, shape index: {}]   ;;  %s1072_s2 = inlined_call_operand.vmem [shape: f32[128,32], index: 2, kind: input, shape index: {}]   ;;  %s1073_s7 = inlined_call_operand.vmem [shape: f32[128,64], index: 7, kind: output, shape index: {}]  }
   0x1   :  { %v478_v0 = vld [vmem:[%s1066_s0 + $0x20] sm:$0xff]  ;;  %v70_v2 = vld [vmem:[%s1066_s0 + $0x10] sm:$0xff]  ;;  %v479_v3 = vld [vmem:[%s1066_s0 + $0x28] sm:$0xff]  ;;  %485 = vrcp.f32 %v487_v35 }
   0x2   :  { %v68_v1 = vld [vmem:[%s1066_s0] sm:$0xff]  ;;  %247 = vxpose.xlu1.b32.start [1/4] (short) %v478_v0, 128  ;;  %108 = vadd.xlane.f32.xlu2 %v70_v2  ;;  %v69_v4 = vld [vmem:[%s1066_s0 + $0x8] sm:$0xff]  ;;  %v71_v5 = vld [vmem:[%s1066_s0 + $0x18] sm:$0xff] }
   0x3   :  { %72 = vxpose.xlu0.b32.start [1/4] (short) %v68_v1, 128  ;;  %v480_v6 = vld [vmem:[%s1066_s0 + $0x30] sm:$0xff]  ;;  %v481_v7 = vld [vmem:[%s1066_s0 + $0x38] sm:$0xff]  ;;  %v58_v54 = vld [vmem:[%s1067_s3] sm:$0xff] }
   0x4   :  { %v62_v55 = vld [vmem:[%s1068_s5] sm:$0xff]  ;;  %v60_v56 = vld [vmem:[%s1067_s3 + $0x10] sm:$0xff]  ;;  %v61_v58 = vld [vmem:[%s1067_s3 + $0x18] sm:$0xff] }
   0x5   :  { %v64_v57 = vld [vmem:[%s1068_s5 + $0x10] sm:$0xff] }
   0x7   :  { %v486_v39 = vpop.eup %485 }
   0x8   :  { %v113_v40 = vmul.f32 128.0, %v486_v39  ;;  %vm117_vm0 = vweird.f32 %v486_v39 }
   0xa   :  { %248 = vxpose.xlu1.b32.cont [2/4] (short) %v479_v3, 128  ;;  %110 = vadd.xlane.f32.xlu2 %v71_v5  ;;  %v114_v42 = vsub.f32 1.0, %v113_v40 }
   0xb   :  { %73 = vxpose.xlu0.b32.cont [2/4] (short) %v69_v4, 128 }
   0xc   :  { %v115_v45 = vmul.f32 %v486_v39, %v114_v42 }
   0xe   :  { %v116_v47 = vadd.f32 %v486_v39, %v115_v45 }
  0x10   :  { %v118_v49 = vsel %vm117_vm0, %v486_v39, %v116_v47 }
  0x12   :  { %249 = vxpose.xlu1.b32.cont [3/4] (short) %v480_v6, 128  ;;  %279 = vadd.xlane.f32.xlu2 %v478_v0  ;;  %v65_v0 = vld [vmem:[%s1068_s5 + $0x18] sm:$0xff] }
  0x13   :  { %74 = vxpose.xlu0.b32.cont [3/4] (short) %v70_v2, 128 }
  0x1a   :  { %250 = vxpose.xlu1.b32.end [4/4] (short) %v481_v7, 128  ;;  %281 = vadd.xlane.f32.xlu2 %v479_v3 }
  0x1b   :  { %75 = vxpose.xlu0.b32.end [4/4] (short) %v71_v5, 128 }
  0x22   :  { %285 = vadd.xlane.f32.xlu2 %v481_v7  ;;  %v63_v7 = vld [vmem:[%s1068_s5 + $0x8] sm:$0xff] }
  0x75   :  { %v109_v34 = vpop.xlane.xlu2 %108 }
  0x76   :  { %v121_v52 = vmul.f32 %v118_v49, %v109_v34 }
  0x78   :  { %v125_v3 = vmul.f32 %v121_v52, %v60_v56 }
  0x7d   :  { %v111_v38 = vpop.xlane.xlu2 %110 }
  0x7e   :  { %v122_v53 = vmul.f32 %v118_v49, %v111_v38 }
  0x80   :  { %v126_v5 = vmul.f32 %v122_v53, %v61_v58  ;;  %v145_v42 = vmul.f32 %v122_v53, %v65_v0 }
  0x85   :  { %v280_v44 = vpop.xlane.xlu2 %279 }
  0x86   :  { %v287_v62 = vmul.f32 %v280_v44, %v118_v49 }
  0x88   :  { %v291_v44 = vmul.f32 %v287_v62, %v58_v54  ;;  %v309_v45 = vmul.f32 %v287_v62, %v62_v55 }
  0x8a   :  { %v295_v53 = vsel %vm127_vm1, %v291_v44, 0.0  ;;  %v313_v62 = vsel %vm127_vm1, %v309_v45, 0.0 }
  0x8d   :  { %v282_v50 = vpop.xlane.xlu2 %281 }
  0x95   :  { %v286_v34 = vpop.xlane.xlu2 %285 }
  0xa6   :  { %v553_v8 = vpop.trf.xlu1 }
  0xa7   :  { %v557_v10 = vpop.trf.xlu0 }
  0xae   :  { %v555_v9 = vpop.trf.xlu1 }
  0xaf   :  { %v561_v12 = vpop.trf.xlu0 }
  0xb6   :  { %v559_v11 = vpop.trf.xlu1 }
  0xb7   :  { %v565_v14 = vpop.trf.xlu0 }
  0xbe   :  { %v563_v13 = vpop.trf.xlu1 }
  0xbf   :  { %v569_v16 = vpop.trf.xlu0 }
  0xc6   :  { %v567_v15 = vpop.trf.xlu1 }
  0xc7   :  { %v573_v18 = vpop.trf.xlu0 }
  0xce   :  { %v571_v17 = vpop.trf.xlu1 }
  0xcf   :  { %v577_v20 = vpop.trf.xlu0 }
  0xd6   :  { %v575_v19 = vpop.trf.xlu1 }
  0xd7   :  { %v581_v22 = vpop.trf.xlu0 }
  0xda   :  { %104 = vadd.xlane.f32.xlu1 %v68_v1  ;;  %v288_v1 = vmul.f32 %v282_v50, %v118_v49 }
  0xde   :  { %v579_v21 = vpop.trf.xlu1 }
  0xdf   :  { %1074 = vst [vmem:[#allocation2_spill] sm:$0xff] %v579_v21  ;;  %v585_v24 = vpop.trf.xlu0  ;;  %v131_v21 = vsel %vm127_vm1, %v125_v3, 0.0 }
  0xe2   :  { %106 = vadd.xlane.f32.xlu1 %v69_v4  ;;  %v144_v4 = vmul.f32 %v121_v52, %v64_v57  ;;  %v310_v52 = vmul.f32 %v288_v1, %v63_v7 }
  0xe6   :  { %v583_v23 = vpop.trf.xlu1 }
  0xe7   :  { %1075 = vst [vmem:[#allocation3_spill] sm:$0xff] %v583_v23  ;;  %v589_v26 = vpop.trf.xlu0 }
  0xec   :  { %283 = vadd.xlane.f32.xlu0 %v480_v6  ;;  %v59_v6 = vld [vmem:[%s1067_s3 + $0x8] sm:$0xff] }
  0xed   :  { %v292_v47 = vmul.f32 %v288_v1, %v59_v6 }
  0xee   :  { %v587_v25 = vpop.trf.xlu1 }
  0xef   :  { %v593_v28 = vpop.trf.xlu0 }
  0xf6   :  { %v591_v27 = vpop.trf.xlu1 }
  0xf7   :  { %v597_v30 = vpop.trf.xlu0 }
  0xfe   :  { %v595_v29 = vpop.trf.xlu1 }
  0xff   :  { %v601_v32 = vpop.trf.xlu0 }
 0x106   :  { %v599_v31 = vpop.trf.xlu1 }
 0x107   :  { %v605_v36 = vpop.trf.xlu0 }
 0x10e   :  { %v603_v33 = vpop.trf.xlu1 }
 0x10f   :  { %v609_v41 = vpop.trf.xlu0 }
 0x116   :  { %v607_v37 = vpop.trf.xlu1 }
 0x117   :  { %v613_v46 = vpop.trf.xlu0 }
 0x11e   :  { %v611_v43 = vpop.trf.xlu1 }
 0x11f   :  { %v630_v61 = vpop.trf.xlu0 }
 0x14d   :  { %v105_v48 = vpop.xlane.xlu1 %104 }
 0x14e   :  { %v119_v51 = vmul.f32 %v118_v49, %v105_v48 }
 0x150   :  { %v123_v59 = vmul.f32 %v119_v51, %v58_v54  ;;  %v142_v60 = vmul.f32 %v119_v51, %v62_v55  ;;  %v290_v51 = vmul.f32 %v286_v34, %v118_v49 }
 0x152   :  { %v128_v35 = vsel %vm127_vm1, %v123_v59, 0.0  ;;  %v146_v38 = vsel %vm127_vm1, %v142_v60, 0.0  ;;  %v149_v59 = vsel %vm127_vm1, %v144_v4, 0.0  ;;  %v133_v60 = vsel %vm127_vm1, %v126_v5, 0.0 }
 0x153   :  { %v294_v1 = vmul.f32 %v290_v51, %v61_v58 }
 0x155   :  { %v107_v63 = vpop.xlane.xlu1 %106 }
 0x156   :  { %v120_v2 = vmul.f32 %v118_v49, %v107_v63 }
 0x158   :  { %v124_v39 = vmul.f32 %v120_v2, %v59_v6  ;;  %v143_v40 = vmul.f32 %v120_v2, %v63_v7  ;;  %v151_v2 = vsel %vm127_vm1, %v145_v42, 0.0  ;;  %v296_v6 = vsel %vm127_vm1, %v292_v47, 0.0 }
 0x159   :  { %v312_v7 = vmul.f32 %v290_v51, %v65_v0 }
 0x15a   :  { %v129_v48 = vsel %vm127_vm1, %v124_v39, 0.0  ;;  %v147_v50 = vsel %vm127_vm1, %v143_v40, 0.0 }
 0x15b   :  { %v130_v63 = vadd.f32 %v129_v48, %v128_v35  ;;  %v148_v23 = vadd.f32 %v147_v50, %v146_v38  ;;  %v314_v35 = vsel %vm127_vm1, %v310_v52, 0.0  ;;  %v297_v48 = vadd.f32 %v296_v6, %v295_v53 }
 0x15c   :  { %v315_v44 = vadd.f32 %v314_v35, %v313_v62  ;;  %v67_v62 = vld [vmem:[%s1070_s6] sm:$0x1] }
 0x15d   :  { %v132_v54 = vadd.f32 %v131_v21, %v130_v63  ;;  %v150_v55 = vadd.f32 %v149_v59, %v148_v23  ;;  %v300_v21 = vsel %vm127_vm1, %v294_v1, 0.0  ;;  %v318_v23 = vsel %vm127_vm1, %v312_v7, 0.0 }
 0x15f   :  { %v284_v34 = vpop.xlane.xlu0 %283  ;;  %v134_v3 = vadd.f32 %v133_v60, %v132_v54  ;;  %v152_v38 = vadd.f32 %v151_v2, %v150_v55  ;;  %v66_v55 = vld [vmem:[%s1069_s4] sm:$0x1] }
 0x160   :  { %v289_v4 = vmul.f32 %v284_v34, %v118_v49 }
 0x161   :  { %v135_v39 = vrot.slane %v134_v3, 4  ;;  %v153_v5 = vrot.slane %v152_v38, 4 }
 0x162   :  { %v293_v40 = vmul.f32 %v289_v4, %v60_v56  ;;  %v311_v42 = vmul.f32 %v289_v4, %v64_v57 }
 0x163   :  { %v136_v45 = vadd.f32 %v135_v39, %v134_v3  ;;  %v154_v47 = vadd.f32 %v153_v5, %v152_v38  ;;  %v666_v39 = vld [vmem:[%s1071_s1 + $0x78] sm:$0xff] }
 0x164   :  { %v298_v58 = vsel %vm127_vm1, %v293_v40, 0.0  ;;  %v316_v0 = vsel %vm127_vm1, %v311_v42, 0.0  ;;  %v671_v5 = vld [vmem:[%s1072_s2 + $0x78] sm:$0xff] }
 0x165   :  { %v299_v50 = vadd.f32 %v298_v58, %v297_v48  ;;  %v317_v51 = vadd.f32 %v316_v0, %v315_v44  ;;  %v137_v52 = vrot.slane %v136_v45, 2  ;;  %v155_v49 = vrot.slane %v154_v47, 2  ;;  %v32_v48 = vld [vmem:[%s1071_s1 + $0x30] sm:$0xff]  ;;  %v42_v0 = vld [vmem:[%s1072_s2] sm:$0xff] }
 0x167   :  { %v301_v63 = vadd.f32 %v300_v21, %v299_v50  ;;  %v319_v59 = vadd.f32 %v318_v23, %v317_v51  ;;  %v138_v56 = vadd.f32 %v137_v52, %v136_v45  ;;  %v156_v57 = vadd.f32 %v155_v49, %v154_v47  ;;  %v48_v23 = vld [vmem:[%s1072_s2 + $0x30] sm:$0xff]  ;;  %v26_v45 = vld [vmem:[%s1071_s1] sm:$0xff]  ;;  %v27_v50 = vld [vmem:[%s1071_s1 + $0x8] sm:$0xff] }
 0x169   :  { %v302_v60 = vrot.slane %v301_v63, 4  ;;  %v320_v2 = vrot.slane %v319_v59, 4  ;;  %v139_v53 = vrot.slane %v138_v56, 1  ;;  %v157_v54 = vrot.slane %v156_v57, 1 }
 0x16b   :  { %v303_v6 = vadd.f32 %v302_v60, %v301_v63  ;;  %v321_v34 = vadd.f32 %v320_v2, %v319_v59  ;;  %v140_v1 = vadd.f32 %v139_v53, %v138_v56  ;;  %v158_v7 = vadd.f32 %v157_v54, %v156_v57  ;;  %v28_v63 = vld [vmem:[%s1071_s1 + $0x10] sm:$0xff]  ;;  %v705_v2 = vld [vmem:[%s1072_s2 + $0x8] sm:$0xff] }
 0x16d   :  { %v304_v35 = vrot.slane %v303_v6, 2  ;;  %v322_v3 = vrot.slane %v321_v34, 2  ;;  %v141_v38 = vadd.f32 %v140_v1, %v66_v55  ;;  %v159_v4 = vadd.f32 %v158_v7, %v67_v62 }
 0x16f   :  { %v305_v40 = vadd.f32 %v304_v35, %v303_v6  ;;  %v323_v42 = vadd.f32 %v322_v3, %v321_v34  ;;  %v676_v44 = vperm.slane %v141_v38, 0  ;;  %v678_v21 = vperm.slane %v159_v4, 0  ;;  %v715_v3 = vld [vmem:[%s1072_s2 + $0x10] sm:$0xff] }
 0x171   :  { %v306_v47 = vrot.slane %v305_v40, 1  ;;  %v324_v58 = vrot.slane %v323_v42, 1  ;;  %v176_v51 = vmul.f32 %v676_v44, %v666_v39  ;;  %v209_v52 = vmul.f32 %v678_v21, %v671_v5 }
 0x172   :  { %v167_v49 = vmul.f32 %v676_v44, %v32_v48  ;;  %v200_v57 = vmul.f32 %v678_v21, %v48_v23  ;;  %v161_v60 = vmul.f32 %v676_v44, %v26_v45  ;;  %v194_v6 = vmul.f32 %v678_v21, %v42_v0 }
 0x173   :  { %v307_v59 = vadd.f32 %v306_v47, %v305_v40  ;;  %v325_v56 = vadd.f32 %v324_v58, %v323_v42  ;;  %v192_v53 = vadd.f32 %v176_v51, %v630_v61  ;;  %v162_v34 = vmul.f32 %v676_v44, %v27_v50  ;;  %v721_v61 = vld [vmem:[%s1071_s1 + $0x18] sm:$0xff] }
 0x174   :  { %v183_v54 = vadd.f32 %v167_v49, %v581_v22  ;;  %v177_v35 = vadd.f32 %v161_v60, %v557_v10  ;;  %v163_v38 = vmul.f32 %v676_v44, %v28_v63  ;;  %v729_v10 = vld [vmem:[%s1071_s1 + $0x20] sm:$0xff]  ;;  %v739_v51 = vld [vmem:[%s1072_s2 + $0x18] sm:$0xff]  ;;  %v164_v49 = vmul.f32 %v676_v44, %v721_v61 }
 0x175   :  { %v308_v1 = vadd.f32 %v307_v59, %v66_v55  ;;  %v326_v7 = vadd.f32 %v325_v56, %v67_v62  ;;  %v225_v22 = vadd.f32 %v209_v52, %v192_v53  ;;  %v178_v40 = vadd.f32 %v162_v34, %v561_v12 }
 0x176   :  { %v216_v4 = vadd.f32 %v200_v57, %v183_v54  ;;  %v195_v55 = vmul.f32 %v678_v21, %v705_v2  ;;  %v210_v47 = vadd.f32 %v194_v6, %v177_v35  ;;  %v179_v58 = vadd.f32 %v163_v38, %v565_v14  ;;  %v775_v6 = vld [vmem:[%s1072_s2 + $0x20] sm:$0xff]  ;;  %v794_v35 = vld [vmem:[%s1072_s2 + $0x28] sm:$0xff]  ;;  %v799_v38 = vld [vmem:[%s1071_s1 + $0x38] sm:$0xff] }
 0x177   :  { %v731_v62 = vperm.slane %v308_v1, 0  ;;  %v733_v42 = vperm.slane %v326_v7, 0  ;;  %241 = vst.msk [vmem:[%s1073_s7 + $0x78] sm:$0xff] %vm127_vm1, %v225_v22  ;;  %v196_v52 = vmul.f32 %v678_v21, %v715_v3  ;;  %v165_v56 = vmul.f32 %v676_v44, %v729_v10 }
 0x178   :  { %v211_v12 = vadd.f32 %v195_v55, %v178_v40  ;;  %232 = vst.msk [vmem:[%s1073_s7 + $0x30] sm:$0xff] %vm127_vm1, %v216_v4  ;;  %v813_v4 = vld [vmem:[%s1072_s2 + $0x38] sm:$0xff]  ;;  %v818_v40 = vld [vmem:[%s1071_s1 + $0x40] sm:$0xff] }
 0x179   :  { %v334_v59 = vmul.f32 %v731_v62, %v32_v48  ;;  %v328_v14 = vmul.f32 %v731_v62, %v26_v45  ;;  %v367_v57 = vmul.f32 %v733_v42, %v48_v23  ;;  %226 = vst.msk [vmem:[%s1073_s7] sm:$0xff] %vm127_vm1, %v210_v47  ;;  %v212_v60 = vadd.f32 %v196_v52, %v179_v58  ;;  %v35_v52 = vld [vmem:[%s1071_s1 + $0x48] sm:$0xff] }
 0x17a   :  { %v197_v48 = vmul.f32 %v678_v21, %v739_v51  ;;  %v361_v45 = vmul.f32 %v733_v42, %v42_v0  ;;  %227 = vst.msk [vmem:[%s1073_s7 + $0x8] sm:$0xff] %vm127_vm1, %v211_v12  ;;  %v180_v23 = vadd.f32 %v164_v49, %v569_v16  ;;  %v329_v34 = vmul.f32 %v731_v62, %v27_v50 }
 0x17b   :  { %v350_v53 = vadd.f32 %v334_v59, %v575_v19  ;;  %v344_v54 = vadd.f32 %v328_v14, %v553_v8  ;;  %228 = vst.msk [vmem:[%s1073_s7 + $0x10] sm:$0xff] %vm127_vm1, %v212_v60  ;;  %v785_v8 = vld [vmem:[%s1071_s1 + $0x28] sm:$0xff]  ;;  %v181_v1 = vadd.f32 %v165_v56, %v573_v18  ;;  %v330_v7 = vmul.f32 %v731_v62, %v28_v63 }
 0x17c   :  { %v213_v16 = vadd.f32 %v197_v48, %v180_v23  ;;  %v198_v50 = vmul.f32 %v678_v21, %v775_v6  ;;  %v166_v18 = vmul.f32 %v676_v44, %v785_v8  ;;  %v345_v63 = vadd.f32 %v329_v34, %v555_v9 }
 0x17d   :  { %v383_v19 = vadd.f32 %v367_v57, %v350_v53  ;;  %v377_v0 = vadd.f32 %v361_v45, %v344_v54  ;;  %v199_v47 = vmul.f32 %v678_v21, %v794_v35  ;;  %v168_v58 = vmul.f32 %v676_v44, %v799_v38  ;;  %v51_v57 = vld [vmem:[%s1072_s2 + $0x48] sm:$0xff]  ;;  %v52_v54 = vld [vmem:[%s1072_s2 + $0x50] sm:$0xff] }
 0x17e   :  { %229 = vst.msk [vmem:[%s1073_s7 + $0x18] sm:$0xff] %vm127_vm1, %v213_v16  ;;  %v214_v22 = vadd.f32 %v198_v50, %v181_v1  ;;  %v182_v55 = vadd.f32 %v166_v18, %v577_v20  ;;  %v362_v9 = vmul.f32 %v733_v42, %v705_v2  ;;  %v346_v12 = vadd.f32 %v330_v7, %v559_v11  ;;  %v835_v20 = vld [vmem:[%s1072_s2 + $0x40] sm:$0xff] }
 0x17f   :  { %421 = vrot.lane.b32.xlu1 %v383_v19, %s488_s24  ;;  %409 = vrot.lane.b32.xlu2 %v377_v0, %s488_s24  ;;  %v184_v59 = vadd.f32 %v168_v58, %v585_v24  ;;  %v201_v11 = vmul.f32 %v678_v21, %v813_v4  ;;  %v169_v2 = vmul.f32 %v676_v44, %v818_v40 }
 0x180   :  { %230 = vst.msk [vmem:[%s1073_s7 + $0x20] sm:$0xff] %vm127_vm1, %v214_v22  ;;  %v215_v49 = vadd.f32 %v199_v47, %v182_v55  ;;  %v378_v14 = vadd.f32 %v362_v9, %v345_v63  ;;  %v363_v56 = vmul.f32 %v733_v42, %v715_v3  ;;  %v202_v48 = vmul.f32 %v678_v21, %v835_v20  ;;  %v36_v3 = vld [vmem:[%s1071_s1 + $0x50] sm:$0xff]  ;;  %v38_v63 = vld [vmem:[%s1071_s1 + $0x60] sm:$0xff] }
 0x181   :  { %v217_v24 = vadd.f32 %v201_v11, %v184_v59  ;;  %v185_v60 = vadd.f32 %v169_v2, %v589_v26  ;;  %v170_v53 = vmul.f32 %v676_v44, %v35_v52  ;;  %v331_v23 = vmul.f32 %v731_v62, %v721_v61  ;;  %v37_v26 = vld [vmem:[%s1071_s1 + $0x58] sm:$0xff]  ;;  %v54_v47 = vld [vmem:[%s1072_s2 + $0x60] sm:$0xff] }
 0x182   :  { %231 = vst.msk [vmem:[%s1073_s7 + $0x28] sm:$0xff] %vm127_vm1, %v215_v49  ;;  %v379_v45 = vadd.f32 %v363_v56, %v346_v12  ;;  %v337_v34 = vmul.f32 %v731_v62, %v35_v52  ;;  %v203_v16 = vmul.f32 %v678_v21, %v51_v57  ;;  %v53_v61 = vld [vmem:[%s1072_s2 + $0x58] sm:$0xff]  ;;  %v370_v7 = vmul.f32 %v733_v42, %v51_v57 }
 0x183   :  { %233 = vst.msk [vmem:[%s1073_s7 + $0x38] sm:$0xff] %vm127_vm1, %v217_v24  ;;  %v218_v19 = vadd.f32 %v202_v48, %v185_v60  ;;  %v186_v0 = vadd.f32 %v170_v53, %v593_v28  ;;  %v171_v50 = vmul.f32 %v676_v44, %v36_v3  ;;  %v204_v18 = vmul.f32 %v678_v21, %v52_v54  ;;  %v55_v53 = vld [vmem:[%s1072_s2 + $0x68] sm:$0xff] }
 0x184   :  { %v353_v1 = vadd.f32 %v337_v34, %v587_v25  ;;  %v338_v22 = vmul.f32 %v731_v62, %v36_v3  ;;  %v371_v25 = vmul.f32 %v733_v42, %v52_v54  ;;  %v172_v55 = vmul.f32 %v676_v44, %v37_v26  ;;  %v40_v3 = vld [vmem:[%s1071_s1 + $0x70] sm:$0xff] }
 0x185   :  { %234 = vst.msk [vmem:[%s1073_s7 + $0x40] sm:$0xff] %vm127_vm1, %v218_v19  ;;  %v219_v28 = vadd.f32 %v203_v16, %v186_v0  ;;  %v187_v9 = vadd.f32 %v171_v50, %v597_v30  ;;  %v205_v12 = vmul.f32 %v678_v21, %v53_v61  ;;  %v339_v52 = vmul.f32 %v731_v62, %v37_v26  ;;  %v39_v30 = vld [vmem:[%s1071_s1 + $0x68] sm:$0xff]  ;;  %v56_v19 = vld [vmem:[%s1072_s2 + $0x70] sm:$0xff] }
 0x186   :  { %v897_v58 = vadd.f32 %v370_v7, %v353_v1  ;;  %v354_v49 = vadd.f32 %v338_v22, %v591_v27  ;;  %v188_v59 = vadd.f32 %v172_v55, %v601_v32  ;;  %v372_v11 = vmul.f32 %v733_v42, %v53_v61 }
 0x187   :  { %411 = vrot.lane.b32.xlu2 %v378_v14, %s488_s24  ;;  %235 = vst.msk [vmem:[%s1073_s7 + $0x48] sm:$0xff] %vm127_vm1, %v219_v28  ;;  %v173_v2 = vmul.f32 %v676_v44, %v38_v63  ;;  %v220_v14 = vadd.f32 %v204_v18, %v187_v9  ;;  %v355_v56 = vadd.f32 %v339_v52, %v595_v29 }
 0x188   :  { %v206_v57 = vmul.f32 %v678_v21, %v54_v47  ;;  %v340_v24 = vmul.f32 %v731_v62, %v38_v63  ;;  %v387_v60 = vadd.f32 %v371_v25, %v354_v49  ;;  %v221_v48 = vadd.f32 %v205_v12, %v188_v59 }
 0x189   :  { %v189_v27 = vadd.f32 %v173_v2, %v605_v36  ;;  %v373_v32 = vmul.f32 %v733_v42, %v54_v47  ;;  %v347_v29 = vadd.f32 %v331_v23, %v563_v13  ;;  %236 = vst.msk [vmem:[%s1073_s7 + $0x50] sm:$0xff] %vm127_vm1, %v220_v14  ;;  %v388_v54 = vadd.f32 %v372_v11, %v355_v56 }
 0x18a   :  { %v356_v36 = vadd.f32 %v340_v24, %v599_v31  ;;  %v174_v34 = vmul.f32 %v676_v44, %v39_v30  ;;  %237 = vst.msk [vmem:[%s1073_s7 + $0x58] sm:$0xff] %vm127_vm1, %v221_v48  ;;  %v341_v13 = vmul.f32 %v731_v62, %v39_v30  ;;  %v374_v23 = vmul.f32 %v733_v42, %v55_v53 }
 0x18b   :  { %v222_v26 = vadd.f32 %v206_v57, %v189_v27  ;;  %v207_v16 = vmul.f32 %v678_v21, %v55_v53  ;;  %v342_v1 = vmul.f32 %v731_v62, %v40_v3  ;;  %v375_v7 = vmul.f32 %v733_v42, %v56_v19 }
 0x18c   :  { %v389_v0 = vadd.f32 %v373_v32, %v356_v36  ;;  %v190_v31 = vadd.f32 %v174_v34, %v609_v41  ;;  %v357_v61 = vadd.f32 %v341_v13, %v603_v33  ;;  %v343_v50 = vmul.f32 %v731_v62, %v666_v39 }
 0x18d   :  { %238 = vst.msk [vmem:[%s1073_s7 + $0x60] sm:$0xff] %vm127_vm1, %v222_v26  ;;  %v208_v63 = vmul.f32 %v678_v21, %v56_v19  ;;  %v364_v28 = vmul.f32 %v733_v42, %v739_v51  ;;  %v358_v33 = vadd.f32 %v342_v1, %v607_v37  ;;  %v332_v21 = vmul.f32 %v731_v62, %v729_v10 }
 0x18e   :  { %v223_v18 = vadd.f32 %v207_v16, %v190_v31  ;;  %v390_v22 = vadd.f32 %v374_v23, %v357_v61  ;;  %v359_v25 = vadd.f32 %v343_v50, %v611_v43  ;;  %v365_v43 = vmul.f32 %v733_v42, %v775_v6 }
 0x18f   :  { %413 = vrot.lane.b32.xlu2 %v379_v45, %s488_s24  ;;  %v175_v45 = vmul.f32 %v676_v44, %v40_v3  ;;  %v376_v44 = vmul.f32 %v733_v42, %v671_v5  ;;  %v391_v55 = vadd.f32 %v375_v7, %v358_v33  ;;  %v348_v37 = vadd.f32 %v332_v21, %v567_v15  ;;  %v1076_v15 = vld [vmem:[#allocation2_spill] sm:$0xff] }
 0x190   :  { %239 = vst.msk [vmem:[%s1073_s7 + $0x68] sm:$0xff] %vm127_vm1, %v223_v18  ;;  %v333_v47 = vmul.f32 %v731_v62, %v785_v8  ;;  %v366_v9 = vmul.f32 %v733_v42, %v794_v35  ;;  %v335_v52 = vmul.f32 %v731_v62, %v799_v38  ;;  %v368_v6 = vmul.f32 %v733_v42, %v813_v4 }
 0x191   :  { %v191_v41 = vadd.f32 %v175_v45, %v613_v46  ;;  %v380_v46 = vadd.f32 %v364_v28, %v347_v29  ;;  %v392_v5 = vadd.f32 %v376_v44, %v359_v25  ;;  %v381_v51 = vadd.f32 %v365_v43, %v348_v37 }
 0x192   :  { %v349_v10 = vadd.f32 %v333_v47, %v571_v17  ;;  %v351_v49 = vadd.f32 %v335_v52, %v1076_v15  ;;  %v336_v8 = vmul.f32 %v731_v62, %v818_v40  ;;  %v1077_v17 = vld [vmem:[#allocation3_spill] sm:$0xff]  ;;  %v369_v35 = vmul.f32 %v733_v42, %v835_v20 }
 0x193   :  { %v224_v39 = vadd.f32 %v208_v63, %v191_v41 }
 0x194   :  { %v382_v12 = vadd.f32 %v366_v9, %v349_v10  ;;  %v384_v59 = vadd.f32 %v368_v6, %v351_v49  ;;  %v352_v11 = vadd.f32 %v336_v8, %v1077_v17 }
 0x195   :  { %240 = vst.msk [vmem:[%s1073_s7 + $0x70] sm:$0xff] %vm127_vm1, %v224_v39 }
 0x196   :  { %v385_v2 = vadd.f32 %v369_v35, %v352_v11 }
 0x197   :  { %415 = vrot.lane.b32.xlu2 %v380_v46, %s488_s24 }
 0x19f   :  { %417 = vrot.lane.b32.xlu2 %v381_v51, %s488_s24 }
 0x1a7   :  { %419 = vrot.lane.b32.xlu2 %v382_v12, %s488_s24 }
 0x1af   :  { %423 = vrot.lane.b32.xlu2 %v384_v59, %s488_s24 }
 0x1b7   :  { %425 = vrot.lane.b32.xlu2 %v385_v2, %s488_s24 }
 0x1bf   :  { %427 = vrot.lane.b32.xlu2 %v897_v58, %s488_s24 }
 0x1c7   :  { %429 = vrot.lane.b32.xlu2 %v387_v60, %s488_s24 }
 0x1cf   :  { %431 = vrot.lane.b32.xlu2 %v388_v54, %s488_s24 }
 0x1d7   :  { %433 = vrot.lane.b32.xlu2 %v389_v0, %s488_s24 }
 0x1d9   :  { %v410_v62 = vpop.permute.xlu2 %409 }
 0x1da   :  { %458 = vst.msk [vmem:[%s1073_s7] sm:$0xff] %vm457_vm2, %v410_v62 }
 0x1df   :  { %435 = vrot.lane.b32.xlu2 %v390_v22, %s488_s24 }
 0x1e1   :  { %v412_v42 = vpop.permute.xlu2 %411 }
 0x1e2   :  { %459 = vst.msk [vmem:[%s1073_s7 + $0x8] sm:$0xff] %vm457_vm2, %v412_v42 }
 0x1e7   :  { %437 = vrot.lane.b32.xlu2 %v391_v55, %s488_s24 }
 0x1e9   :  { %v414_v38 = vpop.permute.xlu2 %413 }
 0x1ea   :  { %460 = vst.msk [vmem:[%s1073_s7 + $0x10] sm:$0xff] %vm457_vm2, %v414_v38 }
 0x1ef   :  { %439 = vrot.lane.b32.xlu2 %v392_v5, %s488_s24 }
 0x1f1   :  { %v422_v4 = vpop.permute.xlu1 %421  ;;  %v416_v40 = vpop.permute.xlu2 %415 }
 0x1f2   :  { %464 = vst.msk [vmem:[%s1073_s7 + $0x30] sm:$0xff] %vm457_vm2, %v422_v4 }
 0x1f3   :  { %461 = vst.msk [vmem:[%s1073_s7 + $0x18] sm:$0xff] %vm457_vm2, %v416_v40 }
 0x1f9   :  { %v418_v20 = vpop.permute.xlu2 %417 }
 0x1fa   :  { %462 = vst.msk [vmem:[%s1073_s7 + $0x20] sm:$0xff] %vm457_vm2, %v418_v20 }
 0x201   :  { %v420_v58 = vpop.permute.xlu2 %419 }
 0x202   :  { %463 = vst.msk [vmem:[%s1073_s7 + $0x28] sm:$0xff] %vm457_vm2, %v420_v58 }
 0x209   :  { %v424_v30 = vpop.permute.xlu2 %423 }
 0x20a   :  { %465 = vst.msk [vmem:[%s1073_s7 + $0x38] sm:$0xff] %vm457_vm2, %v424_v30 }
 0x211   :  { %v426_v14 = vpop.permute.xlu2 %425 }
 0x212   :  { %466 = vst.msk [vmem:[%s1073_s7 + $0x40] sm:$0xff] %vm457_vm2, %v426_v14 }
 0x219   :  { %v428_v56 = vpop.permute.xlu2 %427 }
 0x21a   :  { %467 = vst.msk [vmem:[%s1073_s7 + $0x48] sm:$0xff] %vm457_vm2, %v428_v56 }
 0x221   :  { %v430_v57 = vpop.permute.xlu2 %429 }
 0x222   :  { %468 = vst.msk [vmem:[%s1073_s7 + $0x50] sm:$0xff] %vm457_vm2, %v430_v57 }
 0x229   :  { %v432_v24 = vpop.permute.xlu2 %431 }
 0x22a   :  { %469 = vst.msk [vmem:[%s1073_s7 + $0x58] sm:$0xff] %vm457_vm2, %v432_v24 }
 0x231   :  { %v434_v60 = vpop.permute.xlu2 %433 }
 0x232   :  { %470 = vst.msk [vmem:[%s1073_s7 + $0x60] sm:$0xff] %vm457_vm2, %v434_v60 }
 0x239   :  { %v436_v48 = vpop.permute.xlu2 %435 }
 0x23a   :  { %471 = vst.msk [vmem:[%s1073_s7 + $0x68] sm:$0xff] %vm457_vm2, %v436_v48 }
 0x241   :  { %v438_v27 = vpop.permute.xlu2 %437 }
 0x242   :  { %472 = vst.msk [vmem:[%s1073_s7 + $0x70] sm:$0xff] %vm457_vm2, %v438_v27 }
 0x249   :  { %v440_v32 = vpop.permute.xlu2 %439 }
 0x24a   :  { %473 = vst.msk [vmem:[%s1073_s7 + $0x78] sm:$0xff] %vm457_vm2, %v440_v32 }

</bundles_post_ra>
